<compile_context>
chip_gen: v7x
topology: tpu7x:2x2x1
jax: 0.10.0
libtpu: 0.0.40
codegen_flags: <defaults>
</compile_context>

<pallas_src>
import functools

import jax
import jax.numpy as jnp
from jax.experimental import pallas as pl
from jax.experimental.pallas import tpu as pltpu

_LANE = 128
_SUBLANE = 8
_NEG_INF = -1e30  # finite "minus infinity": exp(pad - max) underflows to 0.0


def _round_up(x: int, m: int) -> int:
    return ((x + m - 1) // m) * m


def _vmem_capacity_bytes() -> int:
    """Physical VMEM of the current generation (per TensorCore on v7x)."""
    try:
        return int(pltpu.get_tpu_info().vmem_capacity_bytes)
    except Exception:
        return 64 << 20  # conservative default (v7x per-TC physical VMEM)


# ----------------------------------------------------------------------------
# Kernels
# ----------------------------------------------------------------------------
def _resident_gather_softmax_kernel(state_sm, logits_ref, probs_ref):
    """Small-table path: logits table resident in VMEM, direct row gather.

    state_sm:   (padded_batch,) int32 in SMEM (scalar prefetch).
    logits_ref: (s_pad, a_pad) f32 in VMEM -- full table, single-buffered.
    probs_ref:  (tb, a_pad) f32 output tile (lane-dense).
    """
    tb = probs_ref.shape[0]
    base = pl.program_id(0) * tb

    # Direct gather: touches only tb*a_pad elements (replaces the
    # (tb, n_states) one-hot + MXU matmul of the previous version).
    def gather_row(r, carry):
        s = state_sm[base + r]
        probs_ref[pl.ds(r, 1), :] = logits_ref[pl.ds(s, 1), :]
        return carry

    jax.lax.fori_loop(0, tb, gather_row, 0)

    rows = probs_ref[...]
    m = jnp.max(rows, axis=-1, keepdims=True)
    e = jnp.exp(rows - m)
    denom = jnp.sum(e, axis=-1, keepdims=True)
    probs_ref[...] = e / denom  # exact normalization (no approx reciprocal)


def _hbm_gather_softmax_kernel(state_sm, logits_hbm, probs_ref, rows_vmem, sem):
    """Large-table path: logits stay in HBM; gather rows with async DMAs.

    state_sm:   (padded_batch,) int32 in SMEM (scalar prefetch).
    logits_hbm: (s_pad, a_pad) f32 raw HBM ref (memory_space=pl.ANY).
    probs_ref:  (tb, a_pad) f32 output tile.
    rows_vmem:  (tb, a_pad) f32 VMEM scratch for the gathered rows.
    sem:        scalar DMA semaphore shared by all row copies.
    """
    tb = probs_ref.shape[0]
    base = pl.program_id(0) * tb

    # Issue all row DMAs (they overlap in flight), then drain.
    def issue(r, carry):
        s = state_sm[base + r]
        pltpu.make_async_copy(
            logits_hbm.at[pl.ds(s, 1), :],
            rows_vmem.at[pl.ds(r, 1), :],
            sem,
        ).start()
        return carry

    jax.lax.fori_loop(0, tb, issue, 0)

    def drain(r, carry):
        # Same-sized descriptor: each wait retires one of the row copies.
        pltpu.make_async_copy(
            logits_hbm.at[pl.ds(0, 1), :],
            rows_vmem.at[pl.ds(r, 1), :],
            sem,
        ).wait()
        return carry

    jax.lax.fori_loop(0, tb, drain, 0)
    # TODO(synk): gather DMAs for tile i are not prefetched behind tile i-1's
    # compute; a look-ahead double-buffered variant would hide that latency.

    rows = rows_vmem[...]
    m = jnp.max(rows, axis=-1, keepdims=True)
    e = jnp.exp(rows - m)
    denom = jnp.sum(e, axis=-1, keepdims=True)
    probs_ref[...] = e / denom


# ----------------------------------------------------------------------------
# Wrapper
# ----------------------------------------------------------------------------
@functools.partial(jax.jit, static_argnames=("batch_tile", "force_hbm_gather"))
def tabular_policy_probs(logits: jax.Array, state: jax.Array, *,
                         batch_tile: int = 512,
                         force_hbm_gather: bool = False) -> jax.Array:
    """softmax(logits[state], axis=-1) via batch-tiled Pallas TPU kernels.

    logits: (n_states, n_actions) float32
    state:  (batch,) integer indices into the first axis of logits
    returns (batch, n_actions) float32 probabilities
    """
    n_states, n_actions = logits.shape
    (batch,) = state.shape

    # Clamp indices so bad inputs can't walk off the table (PyTorch indexing
    # would raise instead; here we silently clamp).
    state = jnp.clip(state.astype(jnp.int32), 0, n_states - 1)

    # Lane-dense action dim: pad to a multiple of 128 with -1e30 so padded
    # columns contribute exactly 0 to the softmax; sublane-pad the state dim.
    a_pad = _round_up(n_actions, _LANE)
    s_pad = _round_up(n_states, _SUBLANE)
    logits_f32 = logits.astype(jnp.float32)
    if a_pad != n_actions or s_pad != n_states:
        logits_f32 = jnp.pad(
            logits_f32, ((0, s_pad - n_states), (0, a_pad - n_actions)),
            constant_values=_NEG_INF)

    # Batch tile: multiple of 8 sublanes, up to `batch_tile` rows per step.
    tb = max(_SUBLANE, _round_up(min(batch_tile, batch), _SUBLANE))
    padded = _round_up(batch, tb)
    n_tiles = padded // tb
    state_p = jnp.pad(state, (0, padded - batch))  # pad with 0 (valid row)

    vmem_bytes = _vmem_capacity_bytes()
    table_bytes = s_pad * a_pad * 4
    out_tile_bytes = tb * a_pad * 4
    # Resident-table budget: per-TC physical VMEM / 4, capped at 12 MiB.
    table_budget = min(vmem_bytes // 4, 12 << 20)
    use_resident = (table_bytes <= table_budget) and not force_hbm_gather

    if use_resident:
        # Explicit scoped-VMEM limit with headroom (covers v5e's 16 MiB default
        # and v7x's 64 MiB physical), even if the table ends up double-buffered.
        vmem_limit = int(min(vmem_bytes,
                             2 * table_bytes + 4 * out_tile_bytes + (2 << 20)))
        out = pl.pallas_call(
            _resident_gather_softmax_kernel,
            out_shape=jax.ShapeDtypeStruct((padded, a_pad), jnp.float32),
            grid_spec=pltpu.PrefetchScalarGridSpec(
                num_scalar_prefetch=1,
                grid=(n_tiles,),
                in_specs=[
                    # Full table, same block every step; single-buffered since
                    # it never changes.
                    pl.BlockSpec((s_pad, a_pad), lambda i, st: (0, 0),
                                 pipeline_mode=pl.Buffered(buffer_count=1)),
                ],
                out_specs=pl.BlockSpec((tb, a_pad), lambda i, st: (i, 0)),
            ),
            compiler_params=pltpu.CompilerParams(
                dimension_semantics=("parallel",),
                vmem_limit_bytes=vmem_limit,
            ),
        )(state_p, logits_f32)
    else:
        # Large table: keep it in HBM, gather rows inside the kernel (no
        # wrapper-side XLA pre-gather -> no doubled HBM traffic).
        out = pl.pallas_call(
            _hbm_gather_softmax_kernel,
            out_shape=jax.ShapeDtypeStruct((padded, a_pad), jnp.float32),
            grid_spec=pltpu.PrefetchScalarGridSpec(
                num_scalar_prefetch=1,
                grid=(n_tiles,),
                in_specs=[pl.BlockSpec(memory_space=pl.ANY)],
                out_specs=pl.BlockSpec((tb, a_pad), lambda i, st: (i, 0)),
                scratch_shapes=[
                    pltpu.VMEM((tb, a_pad), jnp.float32),
                    pltpu.SemaphoreType.DMA(()),
                ],
            ),
            compiler_params=pltpu.CompilerParams(
                dimension_semantics=("parallel",),
            ),
        )(state_p, logits_f32)

    return out[:batch, :n_actions]


class TabularPolicy:
    """JAX mirror of the PyTorch TabularPolicy module."""

    def __init__(self, n_states: int, n_actions: int, key=None):
        if key is None:
            key = jax.random.PRNGKey(0)
        # Deterministic init mirroring torch.randn(n_states, n_actions).
        self.logits = jax.random.normal(key, (n_states, n_actions),
                                        dtype=jnp.float32)

    def forward(self, state: jax.Array):
        # TODO(synk): torch.distributions.Categorical is a sampling /
        # distribution object with no Pallas equivalent; we return its `probs`
        # tensor (the only tensor compute in the forward pass).
        return tabular_policy_probs(self.logits, state)

    __call__ = forward


if __name__ == "__main__":
    key = jax.random.PRNGKey(0)
    k_logits, k_state = jax.random.split(key)

    n_states, n_actions, batch = 16, 32, 8

    policy = TabularPolicy(n_states, n_actions, key=k_logits)
    state = jax.random.randint(k_state, (batch,), 0, n_states, dtype=jnp.int32)

    # Resident-table (VMEM direct-gather) path.
    probs = jax.block_until_ready(policy(state))
    ref = jax.nn.softmax(policy.logits[state], axis=-1)
    assert probs.shape == (batch, n_actions)
    assert jnp.allclose(probs, ref, atol=1e-5, rtol=1e-5), "mismatch vs reference"
    assert jnp.allclose(jnp.sum(probs, axis=-1), 1.0, atol=1e-5), "rows must sum to 1"

    # Also exercise the large-table (in-kernel HBM DMA-gather) path.
    probs_hbm = jax.block_until_ready(
        tabular_policy_probs(policy.logits, state, force_hbm_gather=True))
    assert jnp.allclose(probs_hbm, ref, atol=1e-5, rtol=1e-5), "HBM path mismatch"

    print("KERNEL_OK")
</pallas_src>

<mosaic_0001>
module attributes {stable_mosaic.version = 11 : i64} {
  func.func @_resident_gather_softmax_kernel(%arg0: i32, %arg1: memref<8xi32, #tpu.memory_space<smem>>, %arg2: memref<16x128xf32, #tpu.memory_space<vmem>>, %arg3: memref<8x128xf32, #tpu.memory_space<vmem>>) attributes {dimension_semantics = [#tpu.dimension_semantics<parallel>], iteration_bounds = array<i64: 1>, scalar_prefetch = 1 : i64, scratch_operands = 0 : i64, tpu.core_type = #tpu.core_type<tc>, window_params = [{pipeline_mode = #tpu.pipeline_mode<synchronous>, transform_indices = @transform_0, window_bounds = array<i64: 16, 128>}, {transform_indices = @transform_1, window_bounds = array<i64: 8, 128>}]} {
    %c8_i32 = arith.constant 8 : i32
    %0 = arith.muli %arg0, %c8_i32 : i32
    %c0_i32 = arith.constant 0 : i32
    %c8_i32_0 = arith.constant 8 : i32
    %1 = arith.addi %c0_i32, %c8_i32_0 : i32
    %c1_i32 = arith.constant 1 : i32
    scf.for %arg4 = %c0_i32 to %1 step %c1_i32  : i32 {
      %13 = arith.addi %0, %arg4 : i32
      %14 = arith.index_cast %13 : i32 to index
      %15 = memref.load %arg1[%14] : memref<8xi32, #tpu.memory_space<smem>>
      %16 = arith.index_cast %15 : i32 to index
      %c0_6 = arith.constant 0 : index
      %17 = vector.load %arg2[%16, %c0_6] : memref<16x128xf32, #tpu.memory_space<vmem>>, vector<1x128xf32>
      %18 = arith.index_cast %arg4 : i32 to index
      %c0_7 = arith.constant 0 : index
      %19 = vector.load %arg3[%18, %c0_7] : memref<8x128xf32, #tpu.memory_space<vmem>>, vector<1x128xf32>
      tpu.vector_store %arg3[%18, %c0_7], %17 {strides = array<i32>} : memref<8x128xf32, #tpu.memory_space<vmem>>, vector<1x128xf32>,
    }
    %c8_i32_1 = arith.constant 8 : i32
    %c0 = arith.constant 0 : index
    %c0_2 = arith.constant 0 : index
    %2 = vector.load %arg3[%c0, %c0_2] : memref<8x128xf32, #tpu.memory_space<vmem>>, vector<8x128xf32>
    %cst = arith.constant dense<0xFF800000> : vector<8xf32>
    %3 = vector.multi_reduction <maximumf>, %2, %cst [1] : vector<8x128xf32> to vector<8xf32>
    %4 = vector.shape_cast %3 : vector<8xf32> to vector<8x1xf32>
    %5 = vector.broadcast %4 : vector<8x1xf32> to vector<8x128xf32>
    %6 = arith.subf %2, %5 : vector<8x128xf32>
    %7 = math.exp %6 : vector<8x128xf32>
    %cst_3 = arith.constant dense<0.000000e+00> : vector<8xf32>
    %8 = vector.multi_reduction <add>, %7, %cst_3 [1] : vector<8x128xf32> to vector<8xf32>
    %9 = vector.shape_cast %8 : vector<8xf32> to vector<8x1xf32>
    %10 = vector.broadcast %9 : vector<8x1xf32> to vector<8x128xf32>
    %11 = arith.divf %7, %10 : vector<8x128xf32>
    %c0_4 = arith.constant 0 : index
    %c0_5 = arith.constant 0 : index
    %12 = vector.load %arg3[%c0_4, %c0_5] : memref<8x128xf32, #tpu.memory_space<vmem>>, vector<8x128xf32>
    tpu.vector_store %arg3[%c0_4, %c0_5], %11 {strides = array<i32>} : memref<8x128xf32, #tpu.memory_space<vmem>>, vector<8x128xf32>,
    return
  }
  func.func @transform_0(%arg0: i32, %arg1: memref<8xi32, #tpu.memory_space<smem>>) -> (i32, i32) {
    %c0_i32 = arith.constant 0 : i32
    %c0_i32_0 = arith.constant 0 : i32
    %c0_i32_1 = arith.constant 0 : i32
    return %c0_i32, %c0_i32_0 : i32, i32
  }
  func.func @transform_1(%arg0: i32, %arg1: memref<8xi32, #tpu.memory_space<smem>>) -> (i32, i32) {
    %c0_i32 = arith.constant 0 : i32
    %c0_i32_0 = arith.constant 0 : i32
    return %arg0, %c0_i32 : i32, i32
  }
}

</mosaic_0001>

<bundles_post_ra>
// kernel: tabular_policy_probs.1
= control target key start
LH: loop header
LB: loop body
LE: loop exit
PB: predicated region body
PF: predicated region fallthrough
CT: control target
= control target key end

     0   :  { %s156_s0 = inlined_call_operand.vmem [shape: s32[8], index: 0, kind: input, shape index: {}]   ;;  %s157_s1 = inlined_call_operand.vmem [shape: f32[16,128], index: 1, kind: input, shape index: {}]   ;;  %s158_s2 = inlined_call_operand.hbm [shape: f32[8,128], index: 2, kind: output, shape index: {}]  }
   0x1   :  { %s7_s11 = sshll.u32 %s156_s0, 4  ;;  %s8_s11 = int_to_ptr.vmem [resolvable:$true] %s7_s11 }
   0x2   :  { %s75_s12 = scalar_lea.vmem %s8_s11, 16  ;;  %p80_p1 = scmp.lt.s32.totalorder %s8_s11, %s8_s11 }
   0x3   :  { %p76_p0 = scmp.ne.s32.totalorder %s8_s11, %s75_s12  ;;  %p81_p2 = scmp.lt.s32.totalorder %s75_s12, %s75_s12 }
   0x5   :  { %p82_p3 = por %p81_p2, %p80_p1 }
   0x7   :  { %p83_p4 = pnand %p82_p3, %p76_p0 }
   0x9   :  { %86 = shalt.err (!%p83_p4)  }
   0xa   :  { %s121_s13 = smov [#allocation3]  }
   0xb   :  { %10 = dma.vmem_to_smem %s8_s11, 16, %s121_s13, [#allocation2] }
   0xc   :  { %113 = dma.done.wait [#allocation2], 16 }
   0xd   :  { %114 = vsyncadd [#allocation2], 4294967280 }
   0xe   :  { %12 = sfence }
   0xf   :  { %13 = vsyncpa [#allocation5], 0  ;;  %s117_s14 = smov 0  }
  0x10 LB: > { %s24_s15 = sld [smem:[#allocation3 + %s119_s14]]  ;;  %s27_s18 = scalar_lea.vmem [#allocation4], %s119_s14  ;;  %s119_s14 = sphi %s117_s14, %s22_s14  }
  0x11   : > { %s22_s14 = sadd.s32 1, %s119_s14  }
  0x12   : > { %p19_p5 = scmp.ge.s32.totalorder %s22_s14, 8  }
  0x13   :  { %s122_s19 = smov (%p19_p5), [#allocation4]  }
  0x14   :  { %21 = sbr.rel (!%p19_p5) target bundleno = 16 (0x10), region = 33  ;;  %s46_s20 = sshll.u32 (%p19_p5), %s122_s19, 4  ;;  %s47_s20 = int_to_ptr.vmem [resolvable:$true] %s46_s20 }
  0x15   :  { %s87_s21 = scalar_lea.vmem (%p19_p5), %s47_s20, 128  ;;  %p92_p7 = scmp.lt.s32.totalorder (%p19_p5), %s47_s20, %s47_s20 }
  0x16   : > { %s25_s17 = scalar_lea.vmem %s157_s1, %s24_s15  ;;  %p88_p6 = scmp.ne.s32.totalorder (%p19_p5), %s47_s20, %s87_s21 }
  0x17   : > { %v26_v0 = vld [vmem:[%s25_s17] sm:$0x1]  ;;  %p93_p8 = scmp.lt.s32.totalorder (%p19_p5), %s87_s21, %s87_s21 }
  0x18   : > { %28 = vst [vmem:[%s27_s18] sm:$0x1] %v26_v0 }
  0x19   :  { %p94_p9 = por (%p19_p5), %p93_p8, %p92_p7 }
  0x1b   :  { %p95_p10 = pnand %p94_p9, %p88_p6 }
  0x1f   :  { %v29_v1 = vld [vmem:[#allocation4] sm:$0xff] }
  0x20   :  { %30 = vmax.xlane.f32.xlu0 %v29_v1 }
  0xad   :  { %v31_v2 = vpop.xlane.xlu0 %30 }
  0xae   :  { %v32_v3 = vsub.f32 %v29_v1, %v31_v2 }
  0xb0   :  { %v33_v4 = vmul.f32 1.442695, %v32_v3 }
  0xb2   :  { %71 = vpow2.f32 %v33_v4 }
  0xbc   :  { %v72_v5 = vpop.eup %71 }
  0xbd   :  { %35 = vadd.xlane.f32.xlu0 %v72_v5 }
 0x14a   :  { %v36_v6 = vpop.xlane.xlu0 %35 }
 0x14b   :  { %73 = vrcp.f32 %v36_v6 }
 0x155   :  { %v74_v7 = vpop.eup %73 }
 0x156   :  { %v38_v8 = vmul.f32 %v74_v7, %v72_v5 }
 0x158   :  { %39 = vst [vmem:[#allocation4] sm:$0xff] %v38_v8 }
 0x159   :  { %98 = shalt.err (!%p95_p10)
}
 0x15a   :  { %s99_s23 = scalar_lea.hbm %s158_s2, 128 }
 0x15b   :  { %p100_p11 = scmp.ne.s32.totalorder %s158_s2, %s99_s23  ;;  %p103_p12 = scmp.lt.u32.totalorder %s99_s23, %s158_s2 }
 0x15d   :  { %p105_p13 = pnand %p103_p12, %p100_p11 }
 0x15f   :  { %108 = shalt.err (!%p105_p13)
}
 0x160   :  { %49 = dma.vmem_to_hbm [thread:$0]  %s47_s20, 128, %s158_s2, [#allocation5]  }
 0x161   :  { %115 = dma.done.wait [#allocation5], 128  }
 0x162   :  { %116 = vsyncadd [#allocation5], 4294967168 }
 0x163   :  { %53 = vsyncpa [#allocation5], 1 }

</bundles_post_ra>
